<compile_context>
chip_gen: v7x
topology: tpu7x:2x2x1
jax: 0.10.0
libtpu: 0.0.40
codegen_flags: <defaults>
</compile_context>

<pallas_src>
import functools

import jax
import jax.numpy as jnp
from jax.experimental import pallas as pl
from jax.experimental.pallas import tpu as pltpu


_LANE = 128
_SUBLANE = 16   # covers f32 (8) and bf16 (16) sublane packing


def _round_up(x, m):
    return (x + m - 1) // m * m


def _cdiv(a, b):
    return (a + b - 1) // b


def _vmem_capacity_bytes():
    """Per-core VMEM capacity; conservative 64 MiB (v7x) fallback."""
    try:
        return int(pltpu.get_tpu_info().vmem_capacity_bytes)
    except Exception:
        return 64 << 20


def _invariant_spec(block_shape, index_map):
    """BlockSpec for a grid-invariant operand: single-buffered."""
    if hasattr(pl, "Buffered"):
        try:
            return pl.BlockSpec(block_shape, index_map,
                                pipeline_mode=pl.Buffered(1))
        except TypeError:  # older BlockSpec signature without pipeline_mode
            pass
    return pl.BlockSpec(block_shape, index_map)


# ---------------------------------------------------------------------------
# Kernels
# ---------------------------------------------------------------------------

def _mlp_kernel_resident(x_ref, w1_ref, b1_ref, w2_ref, b2_ref, o_ref):
    # fc1 on the MXU with f32 accumulation; bias + ReLU epilogue in f32 (VPU).
    h = jnp.dot(x_ref[...], w1_ref[...], preferred_element_type=jnp.float32)
    h = jnp.maximum(h + b1_ref[...], 0.0)
    # fc2: operands in the weight dtype (bf16 fast path; no-op for f32),
    # f32 accumulation.
    y = jnp.dot(h.astype(w2_ref.dtype), w2_ref[...],
                preferred_element_type=jnp.float32)
    o_ref[...] = (y + b2_ref[...]).astype(o_ref.dtype)


def _mlp_kernel_ktiled(x_ref, w1_ref, b1_ref, w2_ref, b2_ref, o_ref, acc_ref):
    # Streams hidden-dim blocks: h_k = relu(x @ W1[:, k] + b1[k]);
    # y += h_k @ W2[k, :]. Reduction axis (k) is the innermost grid axis.
    k = pl.program_id(1)

    @pl.when(k == 0)
    def _():
        acc_ref[...] = jnp.zeros_like(acc_ref)

    h = jnp.dot(x_ref[...], w1_ref[...], preferred_element_type=jnp.float32)
    h = jnp.maximum(h + b1_ref[...], 0.0)
    acc_ref[...] += jnp.dot(h.astype(w2_ref.dtype), w2_ref[...],
                            preferred_element_type=jnp.float32)

    @pl.when(k == pl.num_programs(1) - 1)
    def _():
        o_ref[...] = (acc_ref[...] + b2_ref[...]).astype(o_ref.dtype)


# ---------------------------------------------------------------------------
# Parameter preparation (hoisted out of the per-call path)
# ---------------------------------------------------------------------------

def prepare_params(w1, b1, w2, b2, *, compute_dtype=None):
    """Pad hidden/out dims to lane (128) multiples and cast matmul operands
    ONCE, so forward passes do not re-read/re-write the weights in HBM.

    w1: (in_channels, hidden), b1: (hidden,)
    w2: (hidden, out_channels), b2: (out_channels,)
    compute_dtype: dtype of the MXU matmul operands (e.g. jnp.bfloat16);
      None keeps the weight dtype. Accumulation is always f32.
    Zero padding is exact: padded hidden columns give ReLU(0+0)=0 and padded
    W2 rows are 0; padded out columns are sliced off after the kernel.
    """
    in_c, hidden = w1.shape
    out_c = w2.shape[1]
    cd = w1.dtype if compute_dtype is None else jnp.dtype(compute_dtype)
    h_p = _round_up(hidden, _LANE)
    out_p = _round_up(out_c, _LANE)
    w1_p = jnp.pad(w1, ((0, 0), (0, h_p - hidden))).astype(cd)
    w2_p = jnp.pad(w2, ((0, h_p - hidden), (0, out_p - out_c))).astype(cd)
    b1_p = jnp.pad(b1.astype(jnp.float32), (0, h_p - hidden)).reshape(1, h_p)
    b2_p = jnp.pad(b2.astype(jnp.float32), (0, out_p - out_c)).reshape(1, out_p)
    return {"w1": w1_p, "b1": b1_p, "w2": w2_p, "b2": b2_p,
            "in_channels": in_c, "out_channels": out_c}


# ---------------------------------------------------------------------------
# Forward
# ---------------------------------------------------------------------------

def two_layer_mlp(features, params, *, tm=None, force_ktiled=False, tk=None):
    """features: (..., in_channels) -> (..., out_channels)."""
    return _mlp_forward(
        features, params["w1"], params["b1"], params["w2"], params["b2"],
        out_channels=params["out_channels"], tm=tm,
        force_ktiled=force_ktiled, tk=tk)


@functools.partial(jax.jit,
                   static_argnames=("out_channels", "tm", "force_ktiled", "tk"))
def _mlp_forward(features, w1_p, b1_p, w2_p, b2_p, *, out_channels,
                 tm=None, force_ktiled=False, tk=None):
    in_c = features.shape[-1]
    assert w1_p.shape[0] == in_c, "in_channels mismatch with prepared params"
    h_p = w1_p.shape[1]
    out_p = w2_p.shape[1]
    lead = features.shape[:-1]
    out_dtype = features.dtype
    cd = w1_p.dtype                      # compute (matmul operand) dtype
    cd_sz = jnp.dtype(cd).itemsize
    out_sz = jnp.dtype(out_dtype).itemsize

    # Only X is touched per call: flatten rows, cast to compute dtype.
    x2 = features.reshape(-1, in_c).astype(cd)
    m = x2.shape[0]

    # ---- generation-aware planning -----------------------------------------
    vmem_cap = _vmem_capacity_bytes()
    budget = int(vmem_cap * 0.80)        # headroom for compiler scratch etc.

    if tm is None:
        tm = 1024 if vmem_cap >= (100 << 20) else 512   # v5e/v6e vs v7x

    tm_eff = min(tm, _round_up(m, _SUBLANE))
    # Megacore (v7x: 2 TCs): ensure >= 2 grid steps along M when there is
    # enough work to split.
    if _cdiv(m, tm_eff) < 2 and m >= 512:
        tm_eff = _round_up(_cdiv(m, 2), _SUBLANE)

    def resident_bytes(tm_):
        # 1x weights/biases (single-buffered) + 2x x/out tiles + f32 h (and
        # its compute-dtype copy) + f32 y intermediate.
        return ((in_c * h_p + h_p * out_p) * cd_sz + (h_p + out_p) * 4
                + 2 * tm_ * in_c * cd_sz + 2 * tm_ * out_p * out_sz
                + tm_ * h_p * (4 + cd_sz) + tm_ * out_p * 4)

    def ktiled_bytes(tm_, tk_):
        return (2 * (in_c * tk_ + tk_ * out_p) * cd_sz + 2 * tk_ * 4
                + out_p * 4
                + 2 * tm_ * in_c * cd_sz + 2 * tm_ * out_p * out_sz
                + tm_ * out_p * 4 + tm_ * tk_ * (4 + cd_sz))

    use_ktiled = bool(force_ktiled)
    if not use_ktiled and resident_bytes(tm_eff) > budget:
        # Shrink the row tile first; fall back to K-tiling if even a small
        # tile cannot hold the fully-resident weights.
        while tm_eff > 128 and resident_bytes(tm_eff) > budget:
            tm_eff = max(128, _round_up(tm_eff // 2, _SUBLANE))
        use_ktiled = resident_bytes(tm_eff) > budget

    tk_eff = None
    if use_ktiled:
        if tk is None:
            # Largest multiple-of-128 divisor of h_p (preferring <= 1024)
            # that fits the budget; 128 always divides h_p.
            q = h_p // _LANE
            divisors = sorted({d * _LANE for d in range(1, q + 1) if q % d == 0},
                              reverse=True)
            tk_eff = _LANE
            for cand in divisors:
                if cand <= 1024 and ktiled_bytes(tm_eff, cand) <= budget:
                    tk_eff = cand
                    break
        else:
            tk_eff = tk
        assert h_p % tk_eff == 0, "tk must divide the padded hidden dim"
        while tm_eff > 128 and ktiled_bytes(tm_eff, tk_eff) > budget:
            tm_eff = max(128, _round_up(tm_eff // 2, _SUBLANE))

    m_p = _round_up(m, tm_eff)
    x_pad = jnp.pad(x2, ((0, m_p - m), (0, 0)))
    grid_m = m_p // tm_eff

    need = ktiled_bytes(tm_eff, tk_eff) if use_ktiled else resident_bytes(tm_eff)
    vmem_limit = int(min(max(need * 3 // 2, 32 << 20), int(vmem_cap * 0.85)))

    if not use_ktiled:
        out = pl.pallas_call(
            _mlp_kernel_resident,
            out_shape=jax.ShapeDtypeStruct((m_p, out_p), out_dtype),
            grid_spec=pltpu.PrefetchScalarGridSpec(
                num_scalar_prefetch=0,
                grid=(grid_m,),
                in_specs=[
                    pl.BlockSpec((tm_eff, in_c), lambda i: (i, 0)),   # x rows
                    _invariant_spec((in_c, h_p), lambda i: (0, 0)),   # W1
                    _invariant_spec((1, h_p), lambda i: (0, 0)),      # b1
                    _invariant_spec((h_p, out_p), lambda i: (0, 0)),  # W2
                    _invariant_spec((1, out_p), lambda i: (0, 0)),    # b2
                ],
                out_specs=pl.BlockSpec((tm_eff, out_p), lambda i: (i, 0)),
            ),
            compiler_params=pltpu.CompilerParams(
                dimension_semantics=("parallel",),
                vmem_limit_bytes=vmem_limit,
            ),
        )(x_pad, w1_p, b1_p, w2_p, b2_p)
    else:
        grid_k = h_p // tk_eff
        out = pl.pallas_call(
            _mlp_kernel_ktiled,
            out_shape=jax.ShapeDtypeStruct((m_p, out_p), out_dtype),
            grid_spec=pltpu.PrefetchScalarGridSpec(
                num_scalar_prefetch=0,
                grid=(grid_m, grid_k),
                in_specs=[
                    pl.BlockSpec((tm_eff, in_c), lambda i, k: (i, 0)),   # x
                    pl.BlockSpec((in_c, tk_eff), lambda i, k: (0, k)),   # W1 col-blk
                    pl.BlockSpec((1, tk_eff), lambda i, k: (0, k)),      # b1 blk
                    pl.BlockSpec((tk_eff, out_p), lambda i, k: (k, 0)),  # W2 row-blk
                    _invariant_spec((1, out_p), lambda i, k: (0, 0)),    # b2
                ],
                out_specs=pl.BlockSpec((tm_eff, out_p), lambda i, k: (i, 0)),
                scratch_shapes=[pltpu.VMEM((tm_eff, out_p), jnp.float32)],
            ),
            compiler_params=pltpu.CompilerParams(
                dimension_semantics=("parallel", "arbitrary"),
                vmem_limit_bytes=vmem_limit,
            ),
        )(x_pad, w1_p, b1_p, w2_p, b2_p)

    # Drop row/lane padding and restore leading dims.
    return out[:m, :out_channels].reshape(*lead, out_channels)


# ---------------------------------------------------------------------------
# Test scaffolding
# ---------------------------------------------------------------------------

def init_params(key, in_channels, hidden, out_channels, dtype=jnp.float32):
    """Deterministic synthetic init (uniform, Linear-style fan-in scaling).
    Weights stored transposed relative to torch's (out, in): here (in, out)."""
    k1, k2, k3, k4 = jax.random.split(key, 4)
    lim1 = 1.0 / jnp.sqrt(in_channels)
    lim2 = 1.0 / jnp.sqrt(hidden)
    w1 = jax.random.uniform(k1, (in_channels, hidden), dtype, -lim1, lim1)
    b1 = jax.random.uniform(k2, (hidden,), dtype, -lim1, lim1)
    w2 = jax.random.uniform(k3, (hidden, out_channels), dtype, -lim2, lim2)
    b2 = jax.random.uniform(k4, (out_channels,), dtype, -lim2, lim2)
    return w1, b1, w2, b2


def _ref_forward(x, w1, b1, w2, b2, compute_dtype=None):
    """Pure-JAX reference; optionally emulates the kernel's operand rounding."""
    f32 = jnp.float32
    if compute_dtype is None:
        h = jnp.maximum(x @ w1 + b1, 0.0)
        return h @ w2 + b2
    cd = compute_dtype
    xc = x.astype(cd).astype(f32)
    w1c = w1.astype(cd).astype(f32)
    w2c = w2.astype(cd).astype(f32)
    h = jnp.maximum(xc @ w1c + b1, 0.0).astype(cd).astype(f32)
    return h @ w2c + b2


if __name__ == "__main__":
    in_channels, hidden, out_channels = 16, 32, 16
    batch, seq = 2, 8  # flattened rows = 16

    key = jax.random.PRNGKey(0)
    k_x, k_p = jax.random.split(key)
    features = jax.random.normal(k_x, (batch, seq, in_channels), jnp.float32)
    w1, b1, w2, b2 = init_params(k_p, in_channels, hidden, out_channels)

    # --- exact-semantics path (f32 matmul operands) --------------------------
    params_f32 = prepare_params(w1, b1, w2, b2)
    y = jax.block_until_ready(two_layer_mlp(features, params_f32))
    ref = _ref_forward(features, w1, b1, w2, b2)
    assert y.shape == (batch, seq, out_channels)
    assert jnp.allclose(y, ref, atol=1e-5, rtol=1e-5)

    # --- bf16-operand MXU fast path (f32 accumulation) -----------------------
    params_bf16 = prepare_params(w1, b1, w2, b2, compute_dtype=jnp.bfloat16)
    y_bf16 = jax.block_until_ready(two_layer_mlp(features, params_bf16))
    ref_bf16 = _ref_forward(features, w1, b1, w2, b2,
                            compute_dtype=jnp.bfloat16)
    assert jnp.allclose(y_bf16, ref_bf16, atol=2e-2, rtol=2e-2)

    # --- larger row count: exercises the multi-step / megacore-split M grid --
    feats_big = jax.random.normal(k_x, (4, 256, in_channels), jnp.float32)
    y_big = jax.block_until_ready(two_layer_mlp(feats_big, params_f32))
    ref_big = _ref_forward(feats_big, w1, b1, w2, b2)
    assert jnp.allclose(y_big, ref_big, atol=1e-5, rtol=1e-5)

    # --- K-tiled fallback path (forced at small shape for coverage) ----------
    w1k, b1k, w2k, b2k = init_params(k_p, in_channels, 300, 24)
    params_k = prepare_params(w1k, b1k, w2k, b2k)
    y_k = jax.block_until_ready(
        two_layer_mlp(features, params_k, force_ktiled=True, tk=128))
    ref_k = _ref_forward(features, w1k, b1k, w2k, b2k)
    assert y_k.shape == (batch, seq, 24)
    assert jnp.allclose(y_k, ref_k, atol=1e-4, rtol=1e-4)

    print("KERNEL_OK")
</pallas_src>

<mosaic_0001>
module attributes {stable_mosaic.version = 11 : i64} {
  func.func @_mlp_kernel_resident(%arg0: i32, %arg1: memref<16x16xf32, #tpu.memory_space<vmem>>, %arg2: memref<16x128xf32, #tpu.memory_space<vmem>>, %arg3: memref<1x128xf32, #tpu.memory_space<vmem>>, %arg4: memref<128x128xf32, #tpu.memory_space<vmem>>, %arg5: memref<1x128xf32, #tpu.memory_space<vmem>>, %arg6: memref<16x128xf32, #tpu.memory_space<vmem>>) attributes {dimension_semantics = [#tpu.dimension_semantics<parallel>], iteration_bounds = array<i64: 1>, scalar_prefetch = 0 : i64, scratch_operands = 0 : i64, tpu.core_type = #tpu.core_type<tc>, window_params = [{transform_indices = @transform_0, window_bounds = array<i64: 16, 16>}, {pipeline_mode = #tpu.pipeline_mode<synchronous>, transform_indices = @transform_1, window_bounds = array<i64: 16, 128>}, {pipeline_mode = #tpu.pipeline_mode<synchronous>, transform_indices = @transform_2, window_bounds = array<i64: 1, 128>}, {pipeline_mode = #tpu.pipeline_mode<synchronous>, transform_indices = @transform_3, window_bounds = array<i64: 128, 128>}, {pipeline_mode = #tpu.pipeline_mode<synchronous>, transform_indices = @transform_4, window_bounds = array<i64: 1, 128>}, {transform_indices = @transform_5, window_bounds = array<i64: 16, 128>}]} {
    %c0 = arith.constant 0 : index
    %c0_0 = arith.constant 0 : index
    %0 = vector.load %arg1[%c0, %c0_0] : memref<16x16xf32, #tpu.memory_space<vmem>>, vector<16x16xf32>
    %c0_1 = arith.constant 0 : index
    %c0_2 = arith.constant 0 : index
    %1 = vector.load %arg2[%c0_1, %c0_2] : memref<16x128xf32, #tpu.memory_space<vmem>>, vector<16x128xf32>
    %cst = arith.constant dense<0.000000e+00> : vector<16x128xf32>
    %2 = tpu.matmul %0, %1, %cst {dimension_numbers = #tpu.dot_dimension_numbers<[1], [0], [0], [1], [0, 0, 1, 1], [], []>} : vector<16x16xf32>, vector<16x128xf32>, vector<16x128xf32> -> vector<16x128xf32>
    %c0_3 = arith.constant 0 : index
    %c0_4 = arith.constant 0 : index
    %3 = vector.load %arg3[%c0_3, %c0_4] : memref<1x128xf32, #tpu.memory_space<vmem>>, vector<1x128xf32>
    %4 = vector.broadcast %3 : vector<1x128xf32> to vector<16x128xf32>
    %5 = arith.addf %2, %4 : vector<16x128xf32>
    %cst_5 = arith.constant 0.000000e+00 : f32
    %6 = vector.broadcast %cst_5 : f32 to vector<16x128xf32>
    %7 = arith.maximumf %5, %6 : vector<16x128xf32>
    %c0_6 = arith.constant 0 : index
    %c0_7 = arith.constant 0 : index
    %8 = vector.load %arg4[%c0_6, %c0_7] : memref<128x128xf32, #tpu.memory_space<vmem>>, vector<128x128xf32>
    %cst_8 = arith.constant dense<0.000000e+00> : vector<16x128xf32>
    %9 = tpu.matmul %7, %8, %cst_8 {dimension_numbers = #tpu.dot_dimension_numbers<[1], [0], [0], [1], [0, 0, 1, 1], [], []>} : vector<16x128xf32>, vector<128x128xf32>, vector<16x128xf32> -> vector<16x128xf32>
    %c0_9 = arith.constant 0 : index
    %c0_10 = arith.constant 0 : index
    %10 = vector.load %arg5[%c0_9, %c0_10] : memref<1x128xf32, #tpu.memory_space<vmem>>, vector<1x128xf32>
    %11 = vector.broadcast %10 : vector<1x128xf32> to vector<16x128xf32>
    %12 = arith.addf %9, %11 : vector<16x128xf32>
    %c0_11 = arith.constant 0 : index
    %c0_12 = arith.constant 0 : index
    %13 = vector.load %arg6[%c0_11, %c0_12] : memref<16x128xf32, #tpu.memory_space<vmem>>, vector<16x128xf32>
    tpu.vector_store %arg6[%c0_11, %c0_12], %12 {strides = array<i32>} : memref<16x128xf32, #tpu.memory_space<vmem>>, vector<16x128xf32>,
    return
  }
  func.func @transform_0(%arg0: i32) -> (i32, i32) {
    %c0_i32 = arith.constant 0 : i32
    %c0_i32_0 = arith.constant 0 : i32
    return %arg0, %c0_i32 : i32, i32
  }
  func.func @transform_1(%arg0: i32) -> (i32, i32) {
    %c0_i32 = arith.constant 0 : i32
    %c0_i32_0 = arith.constant 0 : i32
    %c0_i32_1 = arith.constant 0 : i32
    return %c0_i32, %c0_i32_0 : i32, i32
  }
  func.func @transform_2(%arg0: i32) -> (i32, i32) {
    %c0_i32 = arith.constant 0 : i32
    %c0_i32_0 = arith.constant 0 : i32
    %c0_i32_1 = arith.constant 0 : i32
    return %c0_i32, %c0_i32_0 : i32, i32
  }
  func.func @transform_3(%arg0: i32) -> (i32, i32) {
    %c0_i32 = arith.constant 0 : i32
    %c0_i32_0 = arith.constant 0 : i32
    %c0_i32_1 = arith.constant 0 : i32
    return %c0_i32, %c0_i32_0 : i32, i32
  }
  func.func @transform_4(%arg0: i32) -> (i32, i32) {
    %c0_i32 = arith.constant 0 : i32
    %c0_i32_0 = arith.constant 0 : i32
    %c0_i32_1 = arith.constant 0 : i32
    return %c0_i32, %c0_i32_0 : i32, i32
  }
  func.func @transform_5(%arg0: i32) -> (i32, i32) {
    %c0_i32 = arith.constant 0 : i32
    %c0_i32_0 = arith.constant 0 : i32
    return %arg0, %c0_i32 : i32, i32
  }
}

</mosaic_0001>

<bundles_post_ra>
// kernel: _mlp_forward.1
= control target key start
LH: loop header
LB: loop body
LE: loop exit
PB: predicated region body
PF: predicated region fallthrough
CT: control target
= control target key end

     0   :  { %10 = vsyncpa [#allocation3], 0  ;;  %s542_s0 = inlined_call_operand.hbm [shape: f32[16,16], index: 0, kind: input, shape index: {}]   ;;  %s543_s1 = inlined_call_operand.hbm [shape: f32[16,128], index: 1, kind: input, shape index: {}]   ;;  %s544_s2 = inlined_call_operand.vmem [shape: f32[1,128], index: 2, kind: input, shape index: {}]   ;;  %s545_s3 = inlined_call_operand.hbm [shape: f32[128,128], index: 3, kind: input, shape index: {}]   ;;  %s546_s4 = inlined_call_operand.vmem [shape: f32[1,128], index: 4, kind: input, shape index: {}]   ;;  %s547_s5 = inlined_call_operand.vmem [shape: f32[16,128], index: 5, kind: output, shape index: {}]  }
   0x1   :  { %11 = vsyncpa [#allocation5], 0  ;;  %s441_s18 = smov [#allocation4]   ;;  %s442_s20 = smov [#allocation2]  }
   0x2   :  { %s29_s19 = sshll.u32 %s441_s18, 4  ;;  %s17_s21 = sshll.u32 %s442_s20, 4  ;;  %s30_s19 = int_to_ptr.vmem [resolvable:$true] %s29_s19  ;;  %s476_s21 = int_to_ptr.vmem [resolvable:$true] %s17_s21 }
   0x3   :  { %s371_s24 = scalar_lea.hbm %s543_s1, 256 }
   0x4   :  { %p372_p0 = scmp.ne.s32.totalorder %s543_s1, %s371_s24  ;;  %p375_p1 = scmp.lt.u32.totalorder %s371_s24, %s543_s1 }
   0x6   :  { %p377_p2 = pnand %p375_p1, %p372_p0 }
   0x8   :  { %380 = shalt.err (!%p377_p2)
}
   0x9   :  { %s381_s29 = scalar_lea.vmem %s30_s19, 256  ;;  %p386_p4 = scmp.lt.s32.totalorder %s30_s19, %s30_s19 }
   0xa   :  { %p382_p3 = scmp.ne.s32.totalorder %s30_s19, %s381_s29  ;;  %p387_p5 = scmp.lt.s32.totalorder %s381_s29, %s381_s29 }
   0xc   :  { %p388_p6 = por %p387_p5, %p386_p4 }
   0xe   :  { %p389_p7 = pnand %p388_p6, %p382_p3 }
  0x10   :  { %392 = shalt.err (!%p389_p7)
}
  0x11   :  { %s443_s30 = smov 128   ;;  %s444_s6 = smov 8  }
  0x12   :  { %35 = dma.hbm_to_vmem [thread:$0]  %s543_s1, 256, %s30_s19, [#allocation5], %s443_s30, %s443_s30, %s444_s6  }
  0x13   :  { %s393_s11 = scalar_lea.hbm %s542_s0, 256 }
  0x14   :  { %p394_p8 = scmp.ne.s32.totalorder %s542_s0, %s393_s11  ;;  %p397_p9 = scmp.lt.u32.totalorder %s393_s11, %s542_s0 }
  0x16   :  { %p399_p10 = pnand %p397_p9, %p394_p8 }
  0x18   :  { %402 = shalt.err (!%p399_p10)
}
  0x19   :  { %s403_s16 = scalar_lea.vmem %s476_s21, 256  ;;  %p408_p12 = scmp.lt.s32.totalorder %s476_s21, %s476_s21 }
  0x1a   :  { %p404_p11 = scmp.ne.s32.totalorder %s476_s21, %s403_s16  ;;  %p409_p13 = scmp.lt.s32.totalorder %s403_s16, %s403_s16 }
  0x1c   :  { %p410_p0 = por %p409_p13, %p408_p12 }
  0x1e   :  { %p411_p1 = pnand %p410_p0, %p404_p11 }
  0x20   :  { %414 = shalt.err (!%p411_p1)
}
  0x21   :  { %23 = dma.hbm_to_vmem [thread:$0]  %s542_s0, 256, %s476_s21, [#allocation3], %s443_s30, %s443_s30, %s444_s6  }
  0x22   :  { %s445_s18 = smov [#allocation6]   ;;  %s415_s23 = scalar_lea.hbm %s545_s3, 2048 }
  0x23   :  { %s43_s19 = sshll.u32 %s445_s18, 4  ;;  %p416_p2 = scmp.ne.s32.totalorder %s545_s3, %s415_s23  ;;  %s44_s19 = int_to_ptr.vmem [resolvable:$true] %s43_s19 }
  0x24   :  { %p419_p3 = scmp.lt.u32.totalorder %s415_s23, %s545_s3 }
  0x26   :  { %p421_p4 = pnand %p419_p3, %p416_p2 }
  0x28   :  { %424 = shalt.err (!%p421_p4)
}
  0x29   :  { %s425_s28 = scalar_lea.vmem %s44_s19, 2048  ;;  %p430_p6 = scmp.lt.s32.totalorder %s44_s19, %s44_s19 }
  0x2a   :  { %p426_p5 = scmp.ne.s32.totalorder %s44_s19, %s425_s28  ;;  %p431_p7 = scmp.lt.s32.totalorder %s425_s28, %s425_s28 }
  0x2c   :  { %p432_p8 = por %p431_p7, %p430_p6 }
  0x2e   :  { %p433_p9 = pnand %p432_p8, %p426_p5 }
  0x30   :  { %436 = shalt.err (!%p433_p9)
}
  0x31   :  { %49 = dma.hbm_to_vmem [thread:$0]  %s545_s3, 2048, %s44_s19, [#allocation5], %s443_s30, %s443_s30, %s444_s6  }
  0x32   :  { %437 = dma.done.wait [#allocation3], 256  }
  0x33   :  { %438 = vsyncadd [#allocation3], 4294967040 }
  0x34   :  { %439 = dma.done.wait [#allocation5], 2304  }
  0x35   :  { %440 = vsyncadd [#allocation5], 4294964992  ;;  %vm72_vm0 = vcmask 130048   ;;  %v63_v0 = vld [vmem:[#allocation4] sm:$0xff]  ;;  %v64_v1 = vld [vmem:[#allocation4 + $0x8] sm:$0xff] }
  0x36   :  { %v61_v2 = vld [vmem:[#allocation2] sm:$0xff]  ;;  %v330_v3 = vpack.c.bf16 %v64_v1, %v63_v0  ;;  %v157_v5 = vld [vmem:[#allocation6 + $0x8] sm:$0xff]  ;;  %v158_v7 = vld [vmem:[#allocation6 + $0x10] sm:$0xff] }
  0x37   :  { %292 = vmatprep.mubr.msk.f32.mxu0 %vm72_vm0, %v61_v2  ;;  %v156_v4 = vld [vmem:[#allocation6] sm:$0xff]  ;;  %v159_v8 = vld [vmem:[#allocation6 + $0x18] sm:$0xff]  ;;  %v161_v11 = vld [vmem:[#allocation6 + $0x28] sm:$0xff] }
  0x38   :  { %v334_v6 = vpack.c.bf16 %v157_v5, %v156_v4  ;;  %331 = vmatprep.subr.bf16.mxu0 %v330_v3  ;;  %v338_v9 = vpack.c.bf16 %v159_v8, %v158_v7  ;;  %v160_v10 = vld [vmem:[#allocation6 + $0x20] sm:$0xff]  ;;  %v62_v12 = vld [vmem:[#allocation2 + $0x8] sm:$0xff]  ;;  %v162_v14 = vld [vmem:[#allocation6 + $0x30] sm:$0xff] }
  0x39   :  { %333 = vmatpush3.bf16.msra.mxu0 %v330_v3  ;;  %v342_v13 = vpack.c.bf16 %v161_v11, %v160_v10  ;;  %v163_v15 = vld [vmem:[#allocation6 + $0x38] sm:$0xff]  ;;  %v164_v17 = vld [vmem:[#allocation6 + $0x40] sm:$0xff]  ;;  %v165_v18 = vld [vmem:[#allocation6 + $0x48] sm:$0xff] }
  0x3a   :  { %335 = vmatprep.subr.bf16.mxu1 %v334_v6  ;;  %v346_v16 = vpack.c.bf16 %v163_v15, %v162_v14  ;;  %v350_v19 = vpack.c.bf16 %v165_v18, %v164_v17  ;;  %v166_v20 = vld [vmem:[#allocation6 + $0x50] sm:$0xff]  ;;  %v167_v21 = vld [vmem:[#allocation6 + $0x58] sm:$0xff]  ;;  %v168_v23 = vld [vmem:[#allocation6 + $0x60] sm:$0xff] }
  0x3b   :  { %337 = vmatpush3.bf16.msra.mxu1 %v334_v6  ;;  %v354_v22 = vpack.c.bf16 %v167_v21, %v166_v20  ;;  %v169_v24 = vld [vmem:[#allocation6 + $0x68] sm:$0xff]  ;;  %v170_v26 = vld [vmem:[#allocation6 + $0x70] sm:$0xff]  ;;  %v171_v27 = vld [vmem:[#allocation6 + $0x78] sm:$0xff] }
  0x3c   :  { %339 = vmatprep.subr.bf16.mxu1 %v338_v9  ;;  %293 = vmatmul.mubr.msk.f32.vlgmr.msra.gmra.mrb[0].mxu0 %vm72_vm0, %v62_v12  ;;  %v358_v25 = vpack.c.bf16 %v169_v24, %v168_v23  ;;  %v362_v28 = vpack.c.bf16 %v171_v27, %v170_v26  ;;  %v262_v29 = vld [vmem:[%s544_s2] ss:$0 sm:$0xff] }
  0x3d   :  { %v265_v36 = vld [vmem:[%s546_s4] ss:$0 sm:$0xff] }
  0x3f   :  { %341 = vmatpush3.bf16.msra.mxu1 %v338_v9 }
  0x40   :  { %343 = vmatprep.subr.bf16.mxu1 %v342_v13 }
  0x43   :  { %345 = vmatpush3.bf16.msra.mxu1 %v342_v13 }
  0x44   :  { %347 = vmatprep.subr.bf16.mxu1 %v346_v16 }
  0x47   :  { %349 = vmatpush3.bf16.msra.mxu1 %v346_v16 }
  0x48   :  { %351 = vmatprep.subr.bf16.mxu1 %v350_v19 }
  0x4b   :  { %353 = vmatpush3.bf16.msra.mxu1 %v350_v19 }
  0x4c   :  { %355 = vmatprep.subr.bf16.mxu1 %v354_v22 }
  0x4f   :  { %357 = vmatpush3.bf16.msra.mxu1 %v354_v22 }
  0x50   :  { %359 = vmatprep.subr.bf16.mxu1 %v358_v25 }
  0x53   :  { %361 = vmatpush3.bf16.msra.mxu1 %v358_v25 }
  0x54   :  { %363 = vmatprep.subr.bf16.mxu1 %v362_v28 }
  0x57   :  { %365 = vmatpush3.bf16.msra.mxu1 %v362_v28 }
 0x10f   :  { %v294_v30 = vpop.f32.mrb[0].mxu0 }
 0x110   :  { %v151_v31 = vadd.f32 %v294_v30, %v262_v29  ;;  %v145_v32 = vpop.f32.mrb[1].mxu0 }
 0x111   :  { %v146_v33 = vadd.f32 %v262_v29, %v145_v32 }
 0x112   :  { %v155_v35 = vmax.f32 %v151_v31, 0.0 }
 0x113   :  { %v154_v34 = vmax.f32 %v146_v33, 0.0 }
 0x115   :  { %327 = vmatprep.mubr.f32.mxu1 %v154_v34 }
 0x116   :  { %328 = vmatmul.mubr.f32.vlgmr.msra.gmra.mrb[0].mxu1 %v155_v35 }
 0x1e9   :  { %v329_v37 = vpop.f32.mrb[0].mxu1 }
 0x1ea   :  { %v251_v38 = vadd.f32 %v329_v37, %v265_v36  ;;  %v245_v39 = vpop.f32.mrb[1].mxu1 }
 0x1eb   :  { %v246_v40 = vadd.f32 %v265_v36, %v245_v39 }
 0x1ec   :  { %255 = vst [vmem:[%s547_s5 + $0x8] sm:$0xff] %v251_v38 }
 0x1ed   :  { %254 = vst [vmem:[%s547_s5] sm:$0xff] %v246_v40 }
 0x1ee   :  { %260 = vsyncpa [#allocation3], 1 }
 0x1ef   :  { %261 = vsyncpa [#allocation5], 1 }

</bundles_post_ra>
